<compile_context>
chip_gen: v5e
topology: v5e:2x2
jax: 0.10.0
libtpu: 0.0.40
codegen_flags: <defaults>
</compile_context>

<pallas_src>
import math
from functools import partial

import jax
import jax.numpy as jnp
from jax.experimental import pallas as pl
from jax.experimental.pallas import tpu as pltpu


# --------------------------------------------------------------------------- #
# fused kernel: LayerNorm(k) + K/V projection + MHA + out-projection
# --------------------------------------------------------------------------- #

def _pooler_kernel(x_ref, lnw_ref, lnb_ref, wk_ref, bk_ref, wv_ref, bv_ref,
                   q_ref, wo_ref, bo_ref, o_ref, *, num_heads, eps):
    """One batch element per grid step."""
    # ---- LayerNorm over context features (f32 elementwise math) ----
    x = x_ref[0].astype(jnp.float32)                          # (Lk, Ck)
    mu = jnp.mean(x, axis=-1, keepdims=True)
    xc = x - mu
    var = jnp.mean(xc * xc, axis=-1, keepdims=True)
    xn = xc * jax.lax.rsqrt(var + eps)                        # rsqrt -> EUP
    xn = xn * lnw_ref[...].astype(jnp.float32) + lnb_ref[...].astype(jnp.float32)
    xn_bf = xn.astype(jnp.bfloat16)                           # bf16 MXU operand, reused per head

    lq = q_ref.shape[1]
    e = o_ref.shape[2]

    # TODO(synk): for large Lk, tile the KV axis with an online-softmax (flash)
    # accumulator instead of materializing the full (Lq, Lk) score matrix.
    # TODO(synk): on v7x (2 TCs) add a second "parallel" grid axis (Lq tiles)
    # so small-N workloads still occupy both TensorCores.
    def head_body(h, acc):
        # Head-major weights: leading-axis indexing only -> no lane slicing.
        kh = jnp.dot(xn_bf, wk_ref[h],
                     preferred_element_type=jnp.float32) + bk_ref[h]       # (Lk, D) f32
        vh = jnp.dot(xn_bf, wv_ref[h],
                     preferred_element_type=jnp.float32) + bv_ref[h]       # (Lk, D) f32
        qh = q_ref[h]                                                      # (Lq, D) bf16, pre-scaled
        # contract on head_dim directly -- no transposed copy of k
        s = jax.lax.dot_general(
            qh, kh.astype(jnp.bfloat16),
            dimension_numbers=(((1,), (1,)), ((), ())),
            preferred_element_type=jnp.float32)                            # (Lq, Lk) f32
        m = jnp.max(s, axis=-1, keepdims=True)
        p = jnp.exp(s - m)
        l = jnp.sum(p, axis=-1, keepdims=True)
        oh = jnp.dot(p.astype(jnp.bfloat16), vh.astype(jnp.bfloat16),
                     preferred_element_type=jnp.float32)                   # (Lq, D) f32
        oh = oh * pl.reciprocal(l, approx=True)                            # EUP slot
        # accumulate the out-projection per head (no head concatenate)
        return acc + jnp.dot(oh.astype(jnp.bfloat16), wo_ref[h],
                             preferred_element_type=jnp.float32)           # (Lq, E) f32

    acc0 = jnp.zeros((lq, e), jnp.float32)
    acc = jax.lax.fori_loop(0, num_heads, head_body, acc0, unroll=True)
    out = acc + bo_ref[...].astype(jnp.float32)
    o_ref[0] = out.astype(o_ref.dtype)


# --------------------------------------------------------------------------- #
# forward pass (AttentionalPooler)
# --------------------------------------------------------------------------- #

def _layer_norm(x, w, b, eps=1e-5):
    mu = jnp.mean(x, axis=-1, keepdims=True)
    var = jnp.mean((x - mu) ** 2, axis=-1, keepdims=True)
    return (x - mu) * jax.lax.rsqrt(var + eps) * w + b


def attentional_pooler_forward(x, params, n_head, eps=1e-5):
    """x: (N, Lk, context_dim) -> (N, n_queries, d_model)."""
    N, Lk, Ck = x.shape
    query = params["query"]
    Lq, E = query.shape
    H = n_head
    D = E // H
    scale = D ** -0.5

    # ln_q + q-projection are a few KB: plain XLA once, fed to the kernel as a
    # head-major, pre-scaled bf16 operand that stays VMEM-resident.
    qn = _layer_norm(query.astype(jnp.float32), params["ln_q_w"],
                     params["ln_q_b"], eps)
    q_proj = (qn @ params["wq_t"] + params["b_q"]) * scale                  # (Lq, E) f32
    q_hm = q_proj.reshape(Lq, H, D).transpose(1, 0, 2).astype(jnp.bfloat16)  # (H, Lq, D)

    flops = int(N * (5 * Lk * Ck            # layer norm
                     + 4 * Lk * Ck * E      # K & V projections
                     + 4 * Lq * Lk * E      # QK^T and PV
                     + 2 * Lq * E * E))     # out-projection
    transcendentals = int(N * (Lk + H * Lq * Lk))
    bytes_accessed = int(4 * N * Lk * Ck + 4 * N * Lq * E          # x in, out
                         + 2 * (2 * Ck * E + E * E + Lq * E)        # bf16 weights + q
                         + 4 * (2 * Ck + 2 * E + E))                # f32 ln/bias

    kernel = partial(_pooler_kernel, num_heads=H, eps=eps)

    return pl.pallas_call(
        kernel,
        out_shape=jax.ShapeDtypeStruct((N, Lq, E), x.dtype),
        grid=(N,),
        in_specs=[
            pl.BlockSpec((1, Lk, Ck), lambda n: (n, 0, 0)),       # per-batch x
            pl.BlockSpec((1, Ck), lambda n: (0, 0)),              # ln_k weight (resident)
            pl.BlockSpec((1, Ck), lambda n: (0, 0)),              # ln_k bias   (resident)
            pl.BlockSpec((H, Ck, D), lambda n: (0, 0, 0)),        # wk head-major (resident, bf16)
            pl.BlockSpec((H, 1, D), lambda n: (0, 0, 0)),         # bk head-major
            pl.BlockSpec((H, Ck, D), lambda n: (0, 0, 0)),        # wv head-major (resident, bf16)
            pl.BlockSpec((H, 1, D), lambda n: (0, 0, 0)),         # bv head-major
            pl.BlockSpec((H, Lq, D), lambda n: (0, 0, 0)),        # q head-major  (resident, bf16)
            pl.BlockSpec((H, D, E), lambda n: (0, 0, 0)),         # wo head-major (resident, bf16)
            pl.BlockSpec((1, E), lambda n: (0, 0)),               # out-proj bias
        ],
        out_specs=pl.BlockSpec((1, Lq, E), lambda n: (n, 0, 0)),
        compiler_params=pltpu.CompilerParams(
            dimension_semantics=("parallel",)),
        cost_estimate=pl.CostEstimate(
            flops=flops, transcendentals=transcendentals,
            bytes_accessed=bytes_accessed),
    )(x,
      params["ln_k_w"].reshape(1, Ck), params["ln_k_b"].reshape(1, Ck),
      params["wk_hm"], params["bk_hm"], params["wv_hm"], params["bv_hm"],
      q_hm, params["wo_hm"], params["bo"].reshape(1, E))


def make_params(query, ln_q_w, ln_q_b, ln_k_w, ln_k_b,
                q_proj_w, k_proj_w, v_proj_w, b_q, b_k, b_v,
                out_proj_w, out_proj_b, n_head):
    """One-time repack: torch (out,in) weights -> head-major, bf16 MXU operands."""
    E = q_proj_w.shape[0]
    Ck = k_proj_w.shape[1]
    H = n_head
    D = E // H
    return dict(
        query=query,
        ln_q_w=ln_q_w, ln_q_b=ln_q_b,
        ln_k_w=ln_k_w, ln_k_b=ln_k_b,
        wq_t=q_proj_w.T,                                   # (E, E) f32 (XLA q path)
        b_q=b_q,
        wk_hm=k_proj_w.T.reshape(Ck, H, D).transpose(1, 0, 2).astype(jnp.bfloat16),
        wv_hm=v_proj_w.T.reshape(Ck, H, D).transpose(1, 0, 2).astype(jnp.bfloat16),
        bk_hm=b_k.reshape(H, 1, D),
        bv_hm=b_v.reshape(H, 1, D),
        wo_hm=out_proj_w.T.reshape(H, D, E).astype(jnp.bfloat16),
        bo=out_proj_b,
    )


# --------------------------------------------------------------------------- #
# pure-JAX reference (mirrors nn.MultiheadAttention with kdim/vdim)
# --------------------------------------------------------------------------- #

def attentional_pooler_reference(x, query, ln_q_w, ln_q_b, ln_k_w, ln_k_b,
                                 q_proj_w, k_proj_w, v_proj_w,
                                 b_q, b_k, b_v, out_proj_w, out_proj_b,
                                 n_head, eps=1e-5):
    N, Lk, Ck = x.shape
    Lq, E = query.shape
    D = E // n_head
    xk = _layer_norm(x, ln_k_w, ln_k_b, eps)
    qn = _layer_norm(query, ln_q_w, ln_q_b, eps)
    q = qn @ q_proj_w.T + b_q                                   # (Lq, E)
    k = xk @ k_proj_w.T + b_k                                   # (N, Lk, E)
    v = xk @ v_proj_w.T + b_v
    qh = q.reshape(Lq, n_head, D).transpose(1, 0, 2)            # (H, Lq, D)
    kh = k.reshape(N, Lk, n_head, D).transpose(0, 2, 1, 3)      # (N, H, Lk, D)
    vh = v.reshape(N, Lk, n_head, D).transpose(0, 2, 1, 3)
    s = jnp.einsum("hqd,nhkd->nhqk", qh, kh) / math.sqrt(D)
    p = jax.nn.softmax(s, axis=-1)
    o = jnp.einsum("nhqk,nhkd->nhqd", p, vh)
    o = o.transpose(0, 2, 1, 3).reshape(N, Lq, E)
    return o @ out_proj_w.T + out_proj_b


# --------------------------------------------------------------------------- #
# main
# --------------------------------------------------------------------------- #

if __name__ == "__main__":
    # small, module-consistent shapes
    N, Lk = 2, 16                 # batch, context sequence length
    d_model, context_dim = 32, 48
    n_head, n_queries = 4, 8      # head_dim = 8

    E, Ck = d_model, context_dim

    key = jax.random.PRNGKey(0)
    keys = jax.random.split(key, 12)

    x = jax.random.normal(keys[0], (N, Lk, Ck), jnp.float32)
    query = jax.random.normal(keys[1], (n_queries, E), jnp.float32)

    s_q = 1.0 / math.sqrt(E)
    s_k = 1.0 / math.sqrt(Ck)
    # torch-layout (out_features, in_features) parameters
    q_proj_w = jax.random.normal(keys[2], (E, E), jnp.float32) * s_q
    k_proj_w = jax.random.normal(keys[3], (E, Ck), jnp.float32) * s_k
    v_proj_w = jax.random.normal(keys[4], (E, Ck), jnp.float32) * s_k
    in_proj_b = jax.random.normal(keys[5], (3 * E,), jnp.float32) * 0.02
    out_proj_w = jax.random.normal(keys[6], (E, E), jnp.float32) * s_q
    out_proj_b = jax.random.normal(keys[7], (E,), jnp.float32) * 0.02
    ln_q_w = 1.0 + 0.1 * jax.random.normal(keys[8], (E,), jnp.float32)
    ln_q_b = 0.1 * jax.random.normal(keys[9], (E,), jnp.float32)
    ln_k_w = 1.0 + 0.1 * jax.random.normal(keys[10], (Ck,), jnp.float32)
    ln_k_b = 0.1 * jax.random.normal(keys[11], (Ck,), jnp.float32)

    b_q, b_k, b_v = jnp.split(in_proj_b, 3)

    # one-time parameter setup (pre-transpose + head-major + bf16 cast)
    params = make_params(query, ln_q_w, ln_q_b, ln_k_w, ln_k_b,
                         q_proj_w, k_proj_w, v_proj_w, b_q, b_k, b_v,
                         out_proj_w, out_proj_b, n_head)

    fwd = jax.jit(lambda x_, p_: attentional_pooler_forward(x_, p_, n_head))
    out = jax.block_until_ready(fwd(x, params))

    ref = attentional_pooler_reference(
        x, query, ln_q_w, ln_q_b, ln_k_w, ln_k_b,
        q_proj_w, k_proj_w, v_proj_w, b_q, b_k, b_v,
        out_proj_w, out_proj_b, n_head)

    assert out.shape == (N, n_queries, d_model)
    # bf16 MXU operands + approximate reciprocal -> loosened tolerance vs the
    # f32 reference (review: expect ~1e-2-level relative error with bf16).
    assert jnp.allclose(out, ref, atol=5e-2, rtol=5e-2), "mismatch vs reference"

    print("KERNEL_OK")
</pallas_src>

<mosaic_0001>
module attributes {stable_mosaic.version = 11 : i64} {
  func.func @_pooler_kernel(%arg0: i32, %arg1: memref<1x16x48xf32, #tpu.memory_space<vmem>>, %arg2: memref<1x48xf32, #tpu.memory_space<vmem>>, %arg3: memref<1x48xf32, #tpu.memory_space<vmem>>, %arg4: memref<4x48x8xbf16, #tpu.memory_space<vmem>>, %arg5: memref<4x1x8xf32, #tpu.memory_space<vmem>>, %arg6: memref<4x48x8xbf16, #tpu.memory_space<vmem>>, %arg7: memref<4x1x8xf32, #tpu.memory_space<vmem>>, %arg8: memref<4x8x8xbf16, #tpu.memory_space<vmem>>, %arg9: memref<4x8x32xbf16, #tpu.memory_space<vmem>>, %arg10: memref<1x32xf32, #tpu.memory_space<vmem>>, %arg11: memref<1x8x32xf32, #tpu.memory_space<vmem>>) attributes {dimension_semantics = [#tpu.dimension_semantics<parallel>], iteration_bounds = array<i64: 2>, scalar_prefetch = 0 : i64, scratch_operands = 0 : i64, tpu.core_type = #tpu.core_type<tc>, window_params = [{transform_indices = @transform_0, window_bounds = array<i64: 1, 16, 48>}, {pipeline_mode = #tpu.pipeline_mode<synchronous>, transform_indices = @transform_1, window_bounds = array<i64: 1, 48>}, {pipeline_mode = #tpu.pipeline_mode<synchronous>, transform_indices = @transform_2, window_bounds = array<i64: 1, 48>}, {pipeline_mode = #tpu.pipeline_mode<synchronous>, transform_indices = @transform_3, window_bounds = array<i64: 4, 48, 8>}, {pipeline_mode = #tpu.pipeline_mode<synchronous>, transform_indices = @transform_4, window_bounds = array<i64: 4, 1, 8>}, {pipeline_mode = #tpu.pipeline_mode<synchronous>, transform_indices = @transform_5, window_bounds = array<i64: 4, 48, 8>}, {pipeline_mode = #tpu.pipeline_mode<synchronous>, transform_indices = @transform_6, window_bounds = array<i64: 4, 1, 8>}, {pipeline_mode = #tpu.pipeline_mode<synchronous>, transform_indices = @transform_7, window_bounds = array<i64: 4, 8, 8>}, {pipeline_mode = #tpu.pipeline_mode<synchronous>, transform_indices = @transform_8, window_bounds = array<i64: 4, 8, 32>}, {pipeline_mode = #tpu.pipeline_mode<synchronous>, transform_indices = @transform_9, window_bounds = array<i64: 1, 32>}, {transform_indices = @transform_10, window_bounds = array<i64: 1, 8, 32>}]} {
    %c0 = arith.constant 0 : index
    %c0_0 = arith.constant 0 : index
    %c0_1 = arith.constant 0 : index
    %0 = vector.load %arg1[%c0, %c0_0, %c0_1] : memref<1x16x48xf32, #tpu.memory_space<vmem>>, vector<1x16x48xf32>
    %1 = vector.shape_cast %0 : vector<1x16x48xf32> to vector<16x48xf32>
    %cst = arith.constant dense<0.000000e+00> : vector<16xf32>
    %2 = vector.multi_reduction <add>, %1, %cst [1] : vector<16x48xf32> to vector<16xf32>
    %3 = vector.shape_cast %2 : vector<16xf32> to vector<16x1xf32>
    %cst_2 = arith.constant 4.800000e+01 : f32
    %4 = vector.broadcast %cst_2 : f32 to vector<16x1xf32>
    %5 = arith.divf %3, %4 : vector<16x1xf32>
    %6 = vector.broadcast %5 : vector<16x1xf32> to vector<16x48xf32>
    %7 = arith.subf %1, %6 : vector<16x48xf32>
    %8 = arith.mulf %7, %7 : vector<16x48xf32>
    %cst_3 = arith.constant dense<0.000000e+00> : vector<16xf32>
    %9 = vector.multi_reduction <add>, %8, %cst_3 [1] : vector<16x48xf32> to vector<16xf32>
    %10 = vector.shape_cast %9 : vector<16xf32> to vector<16x1xf32>
    %cst_4 = arith.constant 4.800000e+01 : f32
    %11 = vector.broadcast %cst_4 : f32 to vector<16x1xf32>
    %12 = arith.divf %10, %11 : vector<16x1xf32>
    %cst_5 = arith.constant 9.99999974E-6 : f32
    %13 = vector.broadcast %cst_5 : f32 to vector<16x1xf32>
    %14 = arith.addf %12, %13 : vector<16x1xf32>
    %15 = math.rsqrt %14 : vector<16x1xf32>
    %16 = vector.broadcast %15 : vector<16x1xf32> to vector<16x48xf32>
    %17 = arith.mulf %7, %16 : vector<16x48xf32>
    %c0_6 = arith.constant 0 : index
    %c0_7 = arith.constant 0 : index
    %18 = vector.load %arg2[%c0_6, %c0_7] : memref<1x48xf32, #tpu.memory_space<vmem>>, vector<1x48xf32>
    %19 = vector.broadcast %18 : vector<1x48xf32> to vector<16x48xf32>
    %20 = arith.mulf %17, %19 : vector<16x48xf32>
    %c0_8 = arith.constant 0 : index
    %c0_9 = arith.constant 0 : index
    %21 = vector.load %arg3[%c0_8, %c0_9] : memref<1x48xf32, #tpu.memory_space<vmem>>, vector<1x48xf32>
    %22 = vector.broadcast %21 : vector<1x48xf32> to vector<16x48xf32>
    %23 = arith.addf %20, %22 : vector<16x48xf32>
    %24 = arith.truncf %23 : vector<16x48xf32> to vector<16x48xbf16>
    %cst_10 = arith.constant 0.000000e+00 : f32
    %25 = vector.broadcast %cst_10 : f32 to vector<8x32xf32>
    %c0_i32 = arith.constant 0 : i32
    %26 = arith.index_cast %c0_i32 : i32 to index
    %c0_11 = arith.constant 0 : index
    %c0_12 = arith.constant 0 : index
    %27 = vector.load %arg4[%26, %c0_11, %c0_12] : memref<4x48x8xbf16, #tpu.memory_space<vmem>>, vector<1x48x8xbf16>
    %28 = vector.shape_cast %27 : vector<1x48x8xbf16> to vector<48x8xbf16>
    %cst_13 = arith.constant dense<0.000000e+00> : vector<16x8xf32>
    %29 = tpu.matmul %24, %28, %cst_13 {dimension_numbers = #tpu.dot_dimension_numbers<[1], [0], [0], [1], [0, 0, 1, 1], [], []>} : vector<16x48xbf16>, vector<48x8xbf16>, vector<16x8xf32> -> vector<16x8xf32>
    %30 = arith.index_cast %c0_i32 : i32 to index
    %c0_14 = arith.constant 0 : index
    %c0_15 = arith.constant 0 : index
    %31 = vector.load %arg5[%30, %c0_14, %c0_15] : memref<4x1x8xf32, #tpu.memory_space<vmem>>, vector<1x1x8xf32>
    %32 = vector.shape_cast %31 : vector<1x1x8xf32> to vector<1x8xf32>
    %33 = vector.broadcast %32 : vector<1x8xf32> to vector<16x8xf32>
    %34 = arith.addf %29, %33 : vector<16x8xf32>
    %35 = arith.index_cast %c0_i32 : i32 to index
    %c0_16 = arith.constant 0 : index
    %c0_17 = arith.constant 0 : index
    %36 = vector.load %arg6[%35, %c0_16, %c0_17] : memref<4x48x8xbf16, #tpu.memory_space<vmem>>, vector<1x48x8xbf16>
    %37 = vector.shape_cast %36 : vector<1x48x8xbf16> to vector<48x8xbf16>
    %cst_18 = arith.constant dense<0.000000e+00> : vector<16x8xf32>
    %38 = tpu.matmul %24, %37, %cst_18 {dimension_numbers = #tpu.dot_dimension_numbers<[1], [0], [0], [1], [0, 0, 1, 1], [], []>} : vector<16x48xbf16>, vector<48x8xbf16>, vector<16x8xf32> -> vector<16x8xf32>
    %39 = arith.index_cast %c0_i32 : i32 to index
    %c0_19 = arith.constant 0 : index
    %c0_20 = arith.constant 0 : index
    %40 = vector.load %arg7[%39, %c0_19, %c0_20] : memref<4x1x8xf32, #tpu.memory_space<vmem>>, vector<1x1x8xf32>
    %41 = vector.shape_cast %40 : vector<1x1x8xf32> to vector<1x8xf32>
    %42 = vector.broadcast %41 : vector<1x8xf32> to vector<16x8xf32>
    %43 = arith.addf %38, %42 : vector<16x8xf32>
    %44 = arith.index_cast %c0_i32 : i32 to index
    %c0_21 = arith.constant 0 : index
    %c0_22 = arith.constant 0 : index
    %45 = vector.load %arg8[%44, %c0_21, %c0_22] : memref<4x8x8xbf16, #tpu.memory_space<vmem>>, vector<1x8x8xbf16>
    %46 = vector.shape_cast %45 : vector<1x8x8xbf16> to vector<8x8xbf16>
    %47 = arith.truncf %34 : vector<16x8xf32> to vector<16x8xbf16>
    %cst_23 = arith.constant dense<0.000000e+00> : vector<8x16xf32>
    %48 = tpu.matmul %46, %47, %cst_23 {dimension_numbers = #tpu.dot_dimension_numbers<[1], [1], [0], [0], [0, 0, 1, 0], [], []>} : vector<8x8xbf16>, vector<16x8xbf16>, vector<8x16xf32> -> vector<8x16xf32>
    %cst_24 = arith.constant dense<0xFF800000> : vector<8xf32>
    %49 = vector.multi_reduction <maximumf>, %48, %cst_24 [1] : vector<8x16xf32> to vector<8xf32>
    %50 = vector.shape_cast %49 : vector<8xf32> to vector<8x1xf32>
    %51 = vector.broadcast %50 : vector<8x1xf32> to vector<8x16xf32>
    %52 = arith.subf %48, %51 : vector<8x16xf32>
    %53 = math.exp %52 : vector<8x16xf32>
    %cst_25 = arith.constant dense<0.000000e+00> : vector<8xf32>
    %54 = vector.multi_reduction <add>, %53, %cst_25 [1] : vector<8x16xf32> to vector<8xf32>
    %55 = vector.shape_cast %54 : vector<8xf32> to vector<8x1xf32>
    %56 = arith.truncf %53 : vector<8x16xf32> to vector<8x16xbf16>
    %57 = arith.truncf %43 : vector<16x8xf32> to vector<16x8xbf16>
    %cst_26 = arith.constant dense<0.000000e+00> : vector<8x8xf32>
    %58 = tpu.matmul %56, %57, %cst_26 {dimension_numbers = #tpu.dot_dimension_numbers<[1], [0], [0], [1], [0, 0, 1, 1], [], []>} : vector<8x16xbf16>, vector<16x8xbf16>, vector<8x8xf32> -> vector<8x8xf32>
    %59 = tpu.reciprocal %55 {approx = true} : vector<8x1xf32> -> vector<8x1xf32>
    %60 = vector.broadcast %59 : vector<8x1xf32> to vector<8x8xf32>
    %61 = arith.mulf %58, %60 : vector<8x8xf32>
    %62 = arith.truncf %61 : vector<8x8xf32> to vector<8x8xbf16>
    %63 = arith.index_cast %c0_i32 : i32 to index
    %c0_27 = arith.constant 0 : index
    %c0_28 = arith.constant 0 : index
    %64 = vector.load %arg9[%63, %c0_27, %c0_28] : memref<4x8x32xbf16, #tpu.memory_space<vmem>>, vector<1x8x32xbf16>
    %65 = vector.shape_cast %64 : vector<1x8x32xbf16> to vector<8x32xbf16>
    %cst_29 = arith.constant dense<0.000000e+00> : vector<8x32xf32>
    %66 = tpu.matmul %62, %65, %cst_29 {dimension_numbers = #tpu.dot_dimension_numbers<[1], [0], [0], [1], [0, 0, 1, 1], [], []>} : vector<8x8xbf16>, vector<8x32xbf16>, vector<8x32xf32> -> vector<8x32xf32>
    %67 = arith.addf %25, %66 : vector<8x32xf32>
    %c1_i32 = arith.constant 1 : i32
    %68 = arith.index_cast %c1_i32 : i32 to index
    %c0_30 = arith.constant 0 : index
    %c0_31 = arith.constant 0 : index
    %69 = vector.load %arg4[%68, %c0_30, %c0_31] : memref<4x48x8xbf16, #tpu.memory_space<vmem>>, vector<1x48x8xbf16>
    %70 = vector.shape_cast %69 : vector<1x48x8xbf16> to vector<48x8xbf16>
    %cst_32 = arith.constant dense<0.000000e+00> : vector<16x8xf32>
    %71 = tpu.matmul %24, %70, %cst_32 {dimension_numbers = #tpu.dot_dimension_numbers<[1], [0], [0], [1], [0, 0, 1, 1], [], []>} : vector<16x48xbf16>, vector<48x8xbf16>, vector<16x8xf32> -> vector<16x8xf32>
    %72 = arith.index_cast %c1_i32 : i32 to index
    %c0_33 = arith.constant 0 : index
    %c0_34 = arith.constant 0 : index
    %73 = vector.load %arg5[%72, %c0_33, %c0_34] : memref<4x1x8xf32, #tpu.memory_space<vmem>>, vector<1x1x8xf32>
    %74 = vector.shape_cast %73 : vector<1x1x8xf32> to vector<1x8xf32>
    %75 = vector.broadcast %74 : vector<1x8xf32> to vector<16x8xf32>
    %76 = arith.addf %71, %75 : vector<16x8xf32>
    %77 = arith.index_cast %c1_i32 : i32 to index
    %c0_35 = arith.constant 0 : index
    %c0_36 = arith.constant 0 : index
    %78 = vector.load %arg6[%77, %c0_35, %c0_36] : memref<4x48x8xbf16, #tpu.memory_space<vmem>>, vector<1x48x8xbf16>
    %79 = vector.shape_cast %78 : vector<1x48x8xbf16> to vector<48x8xbf16>
    %cst_37 = arith.constant dense<0.000000e+00> : vector<16x8xf32>
    %80 = tpu.matmul %24, %79, %cst_37 {dimension_numbers = #tpu.dot_dimension_numbers<[1], [0], [0], [1], [0, 0, 1, 1], [], []>} : vector<16x48xbf16>, vector<48x8xbf16>, vector<16x8xf32> -> vector<16x8xf32>
    %81 = arith.index_cast %c1_i32 : i32 to index
    %c0_38 = arith.constant 0 : index
    %c0_39 = arith.constant 0 : index
    %82 = vector.load %arg7[%81, %c0_38, %c0_39] : memref<4x1x8xf32, #tpu.memory_space<vmem>>, vector<1x1x8xf32>
    %83 = vector.shape_cast %82 : vector<1x1x8xf32> to vector<1x8xf32>
    %84 = vector.broadcast %83 : vector<1x8xf32> to vector<16x8xf32>
    %85 = arith.addf %80, %84 : vector<16x8xf32>
    %86 = arith.index_cast %c1_i32 : i32 to index
    %c0_40 = arith.constant 0 : index
    %c0_41 = arith.constant 0 : index
    %87 = vector.load %arg8[%86, %c0_40, %c0_41] : memref<4x8x8xbf16, #tpu.memory_space<vmem>>, vector<1x8x8xbf16>
    %88 = vector.shape_cast %87 : vector<1x8x8xbf16> to vector<8x8xbf16>
    %89 = arith.truncf %76 : vector<16x8xf32> to vector<16x8xbf16>
    %cst_42 = arith.constant dense<0.000000e+00> : vector<8x16xf32>
    %90 = tpu.matmul %88, %89, %cst_42 {dimension_numbers = #tpu.dot_dimension_numbers<[1], [1], [0], [0], [0, 0, 1, 0], [], []>} : vector<8x8xbf16>, vector<16x8xbf16>, vector<8x16xf32> -> vector<8x16xf32>
    %cst_43 = arith.constant dense<0xFF800000> : vector<8xf32>
    %91 = vector.multi_reduction <maximumf>, %90, %cst_43 [1] : vector<8x16xf32> to vector<8xf32>
    %92 = vector.shape_cast %91 : vector<8xf32> to vector<8x1xf32>
    %93 = vector.broadcast %92 : vector<8x1xf32> to vector<8x16xf32>
    %94 = arith.subf %90, %93 : vector<8x16xf32>
    %95 = math.exp %94 : vector<8x16xf32>
    %cst_44 = arith.constant dense<0.000000e+00> : vector<8xf32>
    %96 = vector.multi_reduction <add>, %95, %cst_44 [1] : vector<8x16xf32> to vector<8xf32>
    %97 = vector.shape_cast %96 : vector<8xf32> to vector<8x1xf32>
    %98 = arith.truncf %95 : vector<8x16xf32> to vector<8x16xbf16>
    %99 = arith.truncf %85 : vector<16x8xf32> to vector<16x8xbf16>
    %cst_45 = arith.constant dense<0.000000e+00> : vector<8x8xf32>
    %100 = tpu.matmul %98, %99, %cst_45 {dimension_numbers = #tpu.dot_dimension_numbers<[1], [0], [0], [1], [0, 0, 1, 1], [], []>} : vector<8x16xbf16>, vector<16x8xbf16>, vector<8x8xf32> -> vector<8x8xf32>
    %101 = tpu.reciprocal %97 {approx = true} : vector<8x1xf32> -> vector<8x1xf32>
    %102 = vector.broadcast %101 : vector<8x1xf32> to vector<8x8xf32>
    %103 = arith.mulf %100, %102 : vector<8x8xf32>
    %104 = arith.truncf %103 : vector<8x8xf32> to vector<8x8xbf16>
    %105 = arith.index_cast %c1_i32 : i32 to index
    %c0_46 = arith.constant 0 : index
    %c0_47 = arith.constant 0 : index
    %106 = vector.load %arg9[%105, %c0_46, %c0_47] : memref<4x8x32xbf16, #tpu.memory_space<vmem>>, vector<1x8x32xbf16>
    %107 = vector.shape_cast %106 : vector<1x8x32xbf16> to vector<8x32xbf16>
    %cst_48 = arith.constant dense<0.000000e+00> : vector<8x32xf32>
    %108 = tpu.matmul %104, %107, %cst_48 {dimension_numbers = #tpu.dot_dimension_numbers<[1], [0], [0], [1], [0, 0, 1, 1], [], []>} : vector<8x8xbf16>, vector<8x32xbf16>, vector<8x32xf32> -> vector<8x32xf32>
    %109 = arith.addf %67, %108 : vector<8x32xf32>
    %c2_i32 = arith.constant 2 : i32
    %110 = arith.index_cast %c2_i32 : i32 to index
    %c0_49 = arith.constant 0 : index
    %c0_50 = arith.constant 0 : index
    %111 = vector.load %arg4[%110, %c0_49, %c0_50] : memref<4x48x8xbf16, #tpu.memory_space<vmem>>, vector<1x48x8xbf16>
    %112 = vector.shape_cast %111 : vector<1x48x8xbf16> to vector<48x8xbf16>
    %cst_51 = arith.constant dense<0.000000e+00> : vector<16x8xf32>
    %113 = tpu.matmul %24, %112, %cst_51 {dimension_numbers = #tpu.dot_dimension_numbers<[1], [0], [0], [1], [0, 0, 1, 1], [], []>} : vector<16x48xbf16>, vector<48x8xbf16>, vector<16x8xf32> -> vector<16x8xf32>
    %114 = arith.index_cast %c2_i32 : i32 to index
    %c0_52 = arith.constant 0 : index
    %c0_53 = arith.constant 0 : index
    %115 = vector.load %arg5[%114, %c0_52, %c0_53] : memref<4x1x8xf32, #tpu.memory_space<vmem>>, vector<1x1x8xf32>
    %116 = vector.shape_cast %115 : vector<1x1x8xf32> to vector<1x8xf32>
    %117 = vector.broadcast %116 : vector<1x8xf32> to vector<16x8xf32>
    %118 = arith.addf %113, %117 : vector<16x8xf32>
    %119 = arith.index_cast %c2_i32 : i32 to index
    %c0_54 = arith.constant 0 : index
    %c0_55 = arith.constant 0 : index
    %120 = vector.load %arg6[%119, %c0_54, %c0_55] : memref<4x48x8xbf16, #tpu.memory_space<vmem>>, vector<1x48x8xbf16>
    %121 = vector.shape_cast %120 : vector<1x48x8xbf16> to vector<48x8xbf16>
    %cst_56 = arith.constant dense<0.000000e+00> : vector<16x8xf32>
    %122 = tpu.matmul %24, %121, %cst_56 {dimension_numbers = #tpu.dot_dimension_numbers<[1], [0], [0], [1], [0, 0, 1, 1], [], []>} : vector<16x48xbf16>, vector<48x8xbf16>, vector<16x8xf32> -> vector<16x8xf32>
    %123 = arith.index_cast %c2_i32 : i32 to index
    %c0_57 = arith.constant 0 : index
    %c0_58 = arith.constant 0 : index
    %124 = vector.load %arg7[%123, %c0_57, %c0_58] : memref<4x1x8xf32, #tpu.memory_space<vmem>>, vector<1x1x8xf32>
    %125 = vector.shape_cast %124 : vector<1x1x8xf32> to vector<1x8xf32>
    %126 = vector.broadcast %125 : vector<1x8xf32> to vector<16x8xf32>
    %127 = arith.addf %122, %126 : vector<16x8xf32>
    %128 = arith.index_cast %c2_i32 : i32 to index
    %c0_59 = arith.constant 0 : index
    %c0_60 = arith.constant 0 : index
    %129 = vector.load %arg8[%128, %c0_59, %c0_60] : memref<4x8x8xbf16, #tpu.memory_space<vmem>>, vector<1x8x8xbf16>
    %130 = vector.shape_cast %129 : vector<1x8x8xbf16> to vector<8x8xbf16>
    %131 = arith.truncf %118 : vector<16x8xf32> to vector<16x8xbf16>
    %cst_61 = arith.constant dense<0.000000e+00> : vector<8x16xf32>
    %132 = tpu.matmul %130, %131, %cst_61 {dimension_numbers = #tpu.dot_dimension_numbers<[1], [1], [0], [0], [0, 0, 1, 0], [], []>} : vector<8x8xbf16>, vector<16x8xbf16>, vector<8x16xf32> -> vector<8x16xf32>
    %cst_62 = arith.constant dense<0xFF800000> : vector<8xf32>
    %133 = vector.multi_reduction <maximumf>, %132, %cst_62 [1] : vector<8x16xf32> to vector<8xf32>
    %134 = vector.shape_cast %133 : vector<8xf32> to vector<8x1xf32>
    %135 = vector.broadcast %134 : vector<8x1xf32> to vector<8x16xf32>
    %136 = arith.subf %132, %135 : vector<8x16xf32>
    %137 = math.exp %136 : vector<8x16xf32>
    %cst_63 = arith.constant dense<0.000000e+00> : vector<8xf32>
    %138 = vector.multi_reduction <add>, %137, %cst_63 [1] : vector<8x16xf32> to vector<8xf32>
    %139 = vector.shape_cast %138 : vector<8xf32> to vector<8x1xf32>
    %140 = arith.truncf %137 : vector<8x16xf32> to vector<8x16xbf16>
    %141 = arith.truncf %127 : vector<16x8xf32> to vector<16x8xbf16>
    %cst_64 = arith.constant dense<0.000000e+00> : vector<8x8xf32>
    %142 = tpu.matmul %140, %141, %cst_64 {dimension_numbers = #tpu.dot_dimension_numbers<[1], [0], [0], [1], [0, 0, 1, 1], [], []>} : vector<8x16xbf16>, vector<16x8xbf16>, vector<8x8xf32> -> vector<8x8xf32>
    %143 = tpu.reciprocal %139 {approx = true} : vector<8x1xf32> -> vector<8x1xf32>
    %144 = vector.broadcast %143 : vector<8x1xf32> to vector<8x8xf32>
    %145 = arith.mulf %142, %144 : vector<8x8xf32>
    %146 = arith.truncf %145 : vector<8x8xf32> to vector<8x8xbf16>
    %147 = arith.index_cast %c2_i32 : i32 to index
    %c0_65 = arith.constant 0 : index
    %c0_66 = arith.constant 0 : index
    %148 = vector.load %arg9[%147, %c0_65, %c0_66] : memref<4x8x32xbf16, #tpu.memory_space<vmem>>, vector<1x8x32xbf16>
    %149 = vector.shape_cast %148 : vector<1x8x32xbf16> to vector<8x32xbf16>
    %cst_67 = arith.constant dense<0.000000e+00> : vector<8x32xf32>
    %150 = tpu.matmul %146, %149, %cst_67 {dimension_numbers = #tpu.dot_dimension_numbers<[1], [0], [0], [1], [0, 0, 1, 1], [], []>} : vector<8x8xbf16>, vector<8x32xbf16>, vector<8x32xf32> -> vector<8x32xf32>
    %151 = arith.addf %109, %150 : vector<8x32xf32>
    %c3_i32 = arith.constant 3 : i32
    %152 = arith.index_cast %c3_i32 : i32 to index
    %c0_68 = arith.constant 0 : index
    %c0_69 = arith.constant 0 : index
    %153 = vector.load %arg4[%152, %c0_68, %c0_69] : memref<4x48x8xbf16, #tpu.memory_space<vmem>>, vector<1x48x8xbf16>
    %154 = vector.shape_cast %153 : vector<1x48x8xbf16> to vector<48x8xbf16>
    %cst_70 = arith.constant dense<0.000000e+00> : vector<16x8xf32>
    %155 = tpu.matmul %24, %154, %cst_70 {dimension_numbers = #tpu.dot_dimension_numbers<[1], [0], [0], [1], [0, 0, 1, 1], [], []>} : vector<16x48xbf16>, vector<48x8xbf16>, vector<16x8xf32> -> vector<16x8xf32>
    %156 = arith.index_cast %c3_i32 : i32 to index
    %c0_71 = arith.constant 0 : index
    %c0_72 = arith.constant 0 : index
    %157 = vector.load %arg5[%156, %c0_71, %c0_72] : memref<4x1x8xf32, #tpu.memory_space<vmem>>, vector<1x1x8xf32>
    %158 = vector.shape_cast %157 : vector<1x1x8xf32> to vector<1x8xf32>
    %159 = vector.broadcast %158 : vector<1x8xf32> to vector<16x8xf32>
    %160 = arith.addf %155, %159 : vector<16x8xf32>
    %161 = arith.index_cast %c3_i32 : i32 to index
    %c0_73 = arith.constant 0 : index
    %c0_74 = arith.constant 0 : index
    %162 = vector.load %arg6[%161, %c0_73, %c0_74] : memref<4x48x8xbf16, #tpu.memory_space<vmem>>, vector<1x48x8xbf16>
    %163 = vector.shape_cast %162 : vector<1x48x8xbf16> to vector<48x8xbf16>
    %cst_75 = arith.constant dense<0.000000e+00> : vector<16x8xf32>
    %164 = tpu.matmul %24, %163, %cst_75 {dimension_numbers = #tpu.dot_dimension_numbers<[1], [0], [0], [1], [0, 0, 1, 1], [], []>} : vector<16x48xbf16>, vector<48x8xbf16>, vector<16x8xf32> -> vector<16x8xf32>
    %165 = arith.index_cast %c3_i32 : i32 to index
    %c0_76 = arith.constant 0 : index
    %c0_77 = arith.constant 0 : index
    %166 = vector.load %arg7[%165, %c0_76, %c0_77] : memref<4x1x8xf32, #tpu.memory_space<vmem>>, vector<1x1x8xf32>
    %167 = vector.shape_cast %166 : vector<1x1x8xf32> to vector<1x8xf32>
    %168 = vector.broadcast %167 : vector<1x8xf32> to vector<16x8xf32>
    %169 = arith.addf %164, %168 : vector<16x8xf32>
    %170 = arith.index_cast %c3_i32 : i32 to index
    %c0_78 = arith.constant 0 : index
    %c0_79 = arith.constant 0 : index
    %171 = vector.load %arg8[%170, %c0_78, %c0_79] : memref<4x8x8xbf16, #tpu.memory_space<vmem>>, vector<1x8x8xbf16>
    %172 = vector.shape_cast %171 : vector<1x8x8xbf16> to vector<8x8xbf16>
    %173 = arith.truncf %160 : vector<16x8xf32> to vector<16x8xbf16>
    %cst_80 = arith.constant dense<0.000000e+00> : vector<8x16xf32>
    %174 = tpu.matmul %172, %173, %cst_80 {dimension_numbers = #tpu.dot_dimension_numbers<[1], [1], [0], [0], [0, 0, 1, 0], [], []>} : vector<8x8xbf16>, vector<16x8xbf16>, vector<8x16xf32> -> vector<8x16xf32>
    %cst_81 = arith.constant dense<0xFF800000> : vector<8xf32>
    %175 = vector.multi_reduction <maximumf>, %174, %cst_81 [1] : vector<8x16xf32> to vector<8xf32>
    %176 = vector.shape_cast %175 : vector<8xf32> to vector<8x1xf32>
    %177 = vector.broadcast %176 : vector<8x1xf32> to vector<8x16xf32>
    %178 = arith.subf %174, %177 : vector<8x16xf32>
    %179 = math.exp %178 : vector<8x16xf32>
    %cst_82 = arith.constant dense<0.000000e+00> : vector<8xf32>
    %180 = vector.multi_reduction <add>, %179, %cst_82 [1] : vector<8x16xf32> to vector<8xf32>
    %181 = vector.shape_cast %180 : vector<8xf32> to vector<8x1xf32>
    %182 = arith.truncf %179 : vector<8x16xf32> to vector<8x16xbf16>
    %183 = arith.truncf %169 : vector<16x8xf32> to vector<16x8xbf16>
    %cst_83 = arith.constant dense<0.000000e+00> : vector<8x8xf32>
    %184 = tpu.matmul %182, %183, %cst_83 {dimension_numbers = #tpu.dot_dimension_numbers<[1], [0], [0], [1], [0, 0, 1, 1], [], []>} : vector<8x16xbf16>, vector<16x8xbf16>, vector<8x8xf32> -> vector<8x8xf32>
    %185 = tpu.reciprocal %181 {approx = true} : vector<8x1xf32> -> vector<8x1xf32>
    %186 = vector.broadcast %185 : vector<8x1xf32> to vector<8x8xf32>
    %187 = arith.mulf %184, %186 : vector<8x8xf32>
    %188 = arith.truncf %187 : vector<8x8xf32> to vector<8x8xbf16>
    %189 = arith.index_cast %c3_i32 : i32 to index
    %c0_84 = arith.constant 0 : index
    %c0_85 = arith.constant 0 : index
    %190 = vector.load %arg9[%189, %c0_84, %c0_85] : memref<4x8x32xbf16, #tpu.memory_space<vmem>>, vector<1x8x32xbf16>
    %191 = vector.shape_cast %190 : vector<1x8x32xbf16> to vector<8x32xbf16>
    %cst_86 = arith.constant dense<0.000000e+00> : vector<8x32xf32>
    %192 = tpu.matmul %188, %191, %cst_86 {dimension_numbers = #tpu.dot_dimension_numbers<[1], [0], [0], [1], [0, 0, 1, 1], [], []>} : vector<8x8xbf16>, vector<8x32xbf16>, vector<8x32xf32> -> vector<8x32xf32>
    %193 = arith.addf %151, %192 : vector<8x32xf32>
    %c4_i32 = arith.constant 4 : i32
    %c0_87 = arith.constant 0 : index
    %c0_88 = arith.constant 0 : index
    %194 = vector.load %arg10[%c0_87, %c0_88] : memref<1x32xf32, #tpu.memory_space<vmem>>, vector<1x32xf32>
    %195 = vector.broadcast %194 : vector<1x32xf32> to vector<8x32xf32>
    %196 = arith.addf %193, %195 : vector<8x32xf32>
    %c0_89 = arith.constant 0 : index
    %c0_90 = arith.constant 0 : index
    %c0_91 = arith.constant 0 : index
    %197 = vector.load %arg11[%c0_89, %c0_90, %c0_91] : memref<1x8x32xf32, #tpu.memory_space<vmem>>, vector<1x8x32xf32>
    %198 = vector.shape_cast %197 : vector<1x8x32xf32> to vector<8x32xf32>
    %199 = vector.shape_cast %196 : vector<8x32xf32> to vector<1x8x32xf32>
    tpu.vector_store %arg11[%c0_89, %c0_90, %c0_91], %199 {strides = array<i32>} : memref<1x8x32xf32, #tpu.memory_space<vmem>>, vector<1x8x32xf32>,
    return
  }
  func.func @transform_0(%arg0: i32) -> (i32, i32, i32) {
    %c0_i32 = arith.constant 0 : i32
    %c0_i32_0 = arith.constant 0 : i32
    %c0_i32_1 = arith.constant 0 : i32
    return %arg0, %c0_i32, %c0_i32_0 : i32, i32, i32
  }
  func.func @transform_1(%arg0: i32) -> (i32, i32) {
    %c0_i32 = arith.constant 0 : i32
    %c0_i32_0 = arith.constant 0 : i32
    %c0_i32_1 = arith.constant 0 : i32
    return %c0_i32, %c0_i32_0 : i32, i32
  }
  func.func @transform_2(%arg0: i32) -> (i32, i32) {
    %c0_i32 = arith.constant 0 : i32
    %c0_i32_0 = arith.constant 0 : i32
    %c0_i32_1 = arith.constant 0 : i32
    return %c0_i32, %c0_i32_0 : i32, i32
  }
  func.func @transform_3(%arg0: i32) -> (i32, i32, i32) {
    %c0_i32 = arith.constant 0 : i32
    %c0_i32_0 = arith.constant 0 : i32
    %c0_i32_1 = arith.constant 0 : i32
    %c0_i32_2 = arith.constant 0 : i32
    return %c0_i32, %c0_i32_0, %c0_i32_1 : i32, i32, i32
  }
  func.func @transform_4(%arg0: i32) -> (i32, i32, i32) {
    %c0_i32 = arith.constant 0 : i32
    %c0_i32_0 = arith.constant 0 : i32
    %c0_i32_1 = arith.constant 0 : i32
    %c0_i32_2 = arith.constant 0 : i32
    return %c0_i32, %c0_i32_0, %c0_i32_1 : i32, i32, i32
  }
  func.func @transform_5(%arg0: i32) -> (i32, i32, i32) {
    %c0_i32 = arith.constant 0 : i32
    %c0_i32_0 = arith.constant 0 : i32
    %c0_i32_1 = arith.constant 0 : i32
    %c0_i32_2 = arith.constant 0 : i32
    return %c0_i32, %c0_i32_0, %c0_i32_1 : i32, i32, i32
  }
  func.func @transform_6(%arg0: i32) -> (i32, i32, i32) {
    %c0_i32 = arith.constant 0 : i32
    %c0_i32_0 = arith.constant 0 : i32
    %c0_i32_1 = arith.constant 0 : i32
    %c0_i32_2 = arith.constant 0 : i32
    return %c0_i32, %c0_i32_0, %c0_i32_1 : i32, i32, i32
  }
  func.func @transform_7(%arg0: i32) -> (i32, i32, i32) {
    %c0_i32 = arith.constant 0 : i32
    %c0_i32_0 = arith.constant 0 : i32
    %c0_i32_1 = arith.constant 0 : i32
    %c0_i32_2 = arith.constant 0 : i32
    return %c0_i32, %c0_i32_0, %c0_i32_1 : i32, i32, i32
  }
  func.func @transform_8(%arg0: i32) -> (i32, i32, i32) {
    %c0_i32 = arith.constant 0 : i32
    %c0_i32_0 = arith.constant 0 : i32
    %c0_i32_1 = arith.constant 0 : i32
    %c0_i32_2 = arith.constant 0 : i32
    return %c0_i32, %c0_i32_0, %c0_i32_1 : i32, i32, i32
  }
  func.func @transform_9(%arg0: i32) -> (i32, i32) {
    %c0_i32 = arith.constant 0 : i32
    %c0_i32_0 = arith.constant 0 : i32
    %c0_i32_1 = arith.constant 0 : i32
    return %c0_i32, %c0_i32_0 : i32, i32
  }
  func.func @transform_10(%arg0: i32) -> (i32, i32, i32) {
    %c0_i32 = arith.constant 0 : i32
    %c0_i32_0 = arith.constant 0 : i32
    %c0_i32_1 = arith.constant 0 : i32
    return %arg0, %c0_i32, %c0_i32_0 : i32, i32, i32
  }
}

</mosaic_0001>

<bundles_post_ra>
// kernel: _lambda_.1
= control target key start
LH: loop header
LB: loop body
LE: loop exit
PB: predicated region body
PF: predicated region fallthrough
CT: control target
= control target key end

     0   :  { %s1814_s0 = inlined_call_operand.vmem [shape: f32[2,16,48], index: 0, kind: input, shape index: {}]   ;;  %s1815_s1 = inlined_call_operand.vmem [shape: f32[1,48], index: 1, kind: input, shape index: {}]   ;;  %s1816_s2 = inlined_call_operand.vmem [shape: f32[1,48], index: 2, kind: input, shape index: {}]   ;;  %s1817_s3 = inlined_call_operand.vmem [shape: bf16[4,48,8], index: 3, kind: input, shape index: {}]   ;;  %s1818_s4 = inlined_call_operand.vmem [shape: f32[4,1,8], index: 4, kind: input, shape index: {}]   ;;  %s1819_s5 = inlined_call_operand.vmem [shape: bf16[4,48,8], index: 5, kind: input, shape index: {}]   ;;  %s1820_s6 = inlined_call_operand.vmem [shape: f32[4,1,8], index: 6, kind: input, shape index: {}]   ;;  %s1821_s7 = inlined_call_operand.vmem [shape: bf16[4,8,8], index: 7, kind: input, shape index: {}]   ;;  %s1822_s8 = inlined_call_operand.vmem [shape: bf16[4,8,32], index: 8, kind: input, shape index: {}]   ;;  %s1823_s9 = inlined_call_operand.vmem [shape: f32[1,32], index: 9, kind: input, shape index: {}]   ;;  %s1824_s10 = inlined_call_operand.hbm [shape: f32[2,8,32], index: 10, kind: output, shape index: {}]  }
   0x1   :  { %1825 = sst [smem:[#allocation5_spill]] %s1814_s0 }
   0x2   :  { %15 = vsyncpa [#allocation3], 0 }
   0x3   :  { %17 = vsyncpa [#allocation3 + $0x1], 0  ;;  %s1547_s13 = smov 0   ;;  %s1549_s14 = smov 0  }
   0x4   :  { %s1551_s15 = smov 0   ;;  %s1553_s16 = smov 0  }
   0x5 LB: > { %s1568_s17 = sadd.s32 4294967295, %s1489_s16   ;;  %s1154_s18 = sadd.s32 4294967294, %s1489_s16   ;;  %s1489_s16 = sphi %s1553_s16, %s1832_s16   ;;  %s1485_s15 = sphi %s1551_s15, %s1831_s15   ;;  %s1481_s14 = sphi %s1549_s14, %s1830_s14   ;;  %s1477_s13 = sphi %s1547_s13, %s1829_s13  }
   0x6   : > { %s1572_s19 = sadd.s32 1, %s1489_s16   ;;  %s245_s20 = sadd.s32 1, %s1485_s15 }
   0x7   : > { %s242_s21 = ssub.s32 %s1489_s16, %s1572_s19  ;;  %p255_p0 = scmp.ne.s32.totalorder %s1485_s15, %s1481_s14 }
   0x8   : > { %p243_p1 = scmp.eq.s32.totalorder %s242_s21, 0  ;;  %p256_p2 = scmp.eq.s32.totalorder %s1568_s17, 1 }
   0x9   : > { %p261_p3 = scmp.ne.s32.totalorder %s1481_s14, %s1477_s13  ;;  %p262_p4 = scmp.eq.s32.totalorder %s1154_s18, 1 }
   0xa   : > { %s1583_s22 = scalar_select %p243_p1, %s1485_s15, %s245_s20  }
   0xb   : > { %p1585_p5 = por %p256_p2, %p255_p0  ;;  %p1589_p6 = por %p262_p4, %p261_p3 }
   0xc   : > { %p1157_p7 = scmp.ge.s32.totalorder %s1489_s16, 1  ;;  %p315_p8 = scmp.lt.s32.totalorder %s1489_s16, 3 }
   0xe   : > { %p316_p9 = pnand %p1157_p7, %p315_p8 }
   0xf   : > { %p353_p10 = scmp.lt.s32.totalorder (!%p316_p9), %s1568_s17, 1  ;;  %s1828_s0 = sld [smem:[#allocation5_spill]] (!%p316_p9) }
  0x10   : > { %319 = sbr.rel (%p316_p9) target bundleno = 2086 (0x826), region = 60  ;;  %s1326_s28 = sshll.u32 (!%p316_p9), %s1568_s17, 3 }
  0x11   : > { %s1090_s11 = scalar_lea.hbm (!%p316_p9), %s1824_s10, %s1326_s28 }
  0x15   : > { %s354_s25 = scalar_select %p353_p10, %s1568_s17, 1  ;;  %vm361_vm0 = vcmask 392192   ;;  %v1491_v4 = vmov 48.0   ;;  %v1332_v21 = vld [vmem:[%s1817_s3 + $0x10] sm:$0xff]  ;;  %v1331_v23 = vld [vmem:[%s1817_s3 + $0x8] sm:$0xff]  ;;  %v1330_v27 = vld [vmem:[%s1817_s3] sm:$0xff] }
  0x16   : > { %1405 = vrcp.f32 %v1491_v4  ;;  %v1335_v22 = vld [vmem:[%s1819_s5 + $0x10] sm:$0xff]  ;;  %462 = vmatpush.bf16.msra.mxu0 %v1332_v21  ;;  %v1334_v24 = vld [vmem:[%s1819_s5 + $0x8] sm:$0xff]  ;;  %v1333_v28 = vld [vmem:[%s1819_s5] sm:$0xff]  ;;  %vm515_vm8 = vcmask 64512   ;;  %vm535_vm9 = vcmask 130048   ;;  %vm712_vm10 = vcmask 1043456  }
  0x17   : > { %s1329_s26 = sshll.u32 %s354_s25, 4  ;;  %504 = vmatpush.bf16.msra.mxu1 %v1335_v22  ;;  %v1394_v45 = vld [vmem:[%s1815_s1] ss:$0 sm:$0xff]  ;;  %v1341_v4 = vld [vmem:[%s1819_s5 + $0x28] sm:$0xff]  ;;  %s1094_s25 = sshll.u32 %s1090_s11, 4  ;;  %vm1077_vm11 = vcmask 261120   ;;  %s1095_s25 = int_to_ptr.hbm [resolvable:$true] %s1094_s25 }
  0x18   : > { %s357_s29 = scalar_lea.vmem %s1828_s0, %s1329_s26  ;;  %v1395_v49 = vld [vmem:[%s1816_s2] ss:$0 sm:$0xff]  ;;  %s350_s26 = sand.u32 1, %s1481_s14  }
  0x19   : > { %v359_v0 = vld [vmem:[%s357_s29] sm:$0xff]  ;;  %v360_v2 = vld [vmem:[%s357_s29 + $0x8] sm:$0xff]  ;;  %s1158_s27 = sshll.u32 %s350_s26, 3  ;;  %s1080_s17 = scalar_lea.sflag [#allocation3], %s350_s26 }
  0x1a   : > { %v362_v1 = vsel %vm361_vm0, %v359_v0, 0.0  ;;  %v365_v3 = vsel %vm361_vm0, %v360_v2, 0.0  ;;  %463 = vmatpush.bf16.msra.mxu0 %v1331_v23  ;;  %v1396_v58 = vld [vmem:[%s1818_s4] ss:$0 sm:$0xff]  ;;  %s352_s20 = scalar_lea.vmem [#allocation2], %s1158_s27  ;;  %s1441_s0 = sshra.s32 %s1095_s25, 4  ;;  %s1442_s0 = int_to_ptr.hbm [resolvable:$true] %s1441_s0 }
  0x1b   : > { %363 = vadd.xlane.f32.xlu0 %v362_v1  ;;  %505 = vmatpush.bf16.msra.mxu1 %v1334_v24  ;;  %v1397_v59 = vld [vmem:[%s1820_s6] ss:$0 sm:$0xff]  ;;  %s1092_s21 = sshll.u32 %s352_s20, 4  ;;  %s1443_s29 = scalar_lea.hbm %s1442_s0, 8  ;;  %s1093_s21 = int_to_ptr.vmem [resolvable:$true] %s1092_s21 }
  0x1c   : > { %v1406_v5 = vpop.eup %1405  ;;  %p1444_p11 = scmp.ne.s32.totalorder %s1442_s0, %s1443_s29  ;;  %s1447_s27 = scalar_lea.hbm %s1824_s10, 16 }
  0x1d   : > { %v369_v6 = vmul.f32 48.0, %v1406_v5  ;;  %vm373_vm1 = vweird.f32 %v1406_v5  ;;  %p1448_p0 = scmp.lt.s32.totalorder %s1442_s0, %s1824_s10  ;;  %p1449_p1 = scmp.lt.s32.totalorder %s1447_s27, %s1443_s29 }
  0x1e   : > { %464 = vmatpush.bf16.msra.mxu0 %v1330_v27  ;;  %v566_v27 = vld [vmem:[%s1822_s8] sm:$0xf]  ;;  %p1445_p12 = pnand %p1444_p11, %p1585_p5 }
  0x1f   : > { %v370_v7 = vsub.f32 1.0, %v369_v6  ;;  %506 = vmatpush.bf16.msra.mxu1 %v1333_v28  ;;  %v1340_v6 = vld [vmem:[%s1819_s5 + $0x20] sm:$0xff]  ;;  %v733_v28 = vsel %vm712_vm10, %v566_v27, 0  ;;  %p1450_p2 = por %p1449_p1, %p1448_p0 }
  0x20   : > { %p1446_p13 = pneg %p1445_p12 }
  0x21   : > { %v371_v8 = vmul.f32 %v1406_v5, %v370_v7  ;;  %v513_v7 = vld [vmem:[%s1821_s7] sm:$0xf] }
  0x22   : > { %p1451_p3 = pnand %p1450_p2, %p1446_p13 }
  0x23   : > { %366 = vadd.xlane.f32.xlu0 %v365_v3  ;;  %v372_v9 = vadd.f32 %v1406_v5, %v371_v8  ;;  %v1339_v8 = vld [vmem:[%s1819_s5 + $0x18] sm:$0xff] }
  0x25   : > { %v374_v10 = vsel %vm373_vm1, %v1406_v5, %v372_v9 }
  0x8e   : > { %v364_v11 = vpop.xlane.xlu0 %363 }
  0x8f   : > { %v375_v12 = vmul.f32 %v374_v10, %v364_v11 }
  0x91   : > { %v377_v13 = vsub.f32 %v359_v0, %v375_v12 }
  0x93   : > { %v379_v14 = vmul.f32 %v377_v13, %v377_v13 }
  0x95   : > { %v381_v15 = vsel %vm361_vm0, %v379_v14, 0.0 }
  0x96   : > { %382 = vadd.xlane.f32.xlu1 %v381_v15  ;;  %v367_v16 = vpop.xlane.xlu0 %366 }
  0x97   : > { %v376_v17 = vmul.f32 %v374_v10, %v367_v16 }
  0x99   : > { %v378_v18 = vsub.f32 %v360_v2, %v376_v17 }
  0x9b   : > { %v380_v19 = vmul.f32 %v378_v18, %v378_v18 }
  0x9d   : > { %v384_v20 = vsel %vm361_vm0, %v380_v19, 0.0  ;;  %v1337_v19 = vld [vmem:[%s1817_s3 + $0x20] sm:$0xff] }
  0x9e   : > { %385 = vadd.xlane.f32.xlu1 %v384_v20  ;;  %v1336_v20 = vld [vmem:[%s1817_s3 + $0x18] sm:$0xff] }
 0x109   : > { %v383_v25 = vpop.xlane.xlu1 %382 }
 0x10a   : > { %v387_v26 = vmul.f32 %v383_v25, %v374_v10 }
 0x10c   : > { %v389_v29 = vadd.f32 1e-05, %v387_v26 }
 0x10e   : > { %1407 = vrsqrt.f32 %v389_v29  ;;  %vm397_vm3 = vweird.f32 %v389_v29 }
 0x111   : > { %v386_v30 = vpop.xlane.xlu1 %385 }
 0x112   : > { %v388_v31 = vmul.f32 %v386_v30, %v374_v10 }
 0x114   : > { %v1408_v32 = vpop.eup %1407  ;;  %v390_v33 = vadd.f32 1e-05, %v388_v31 }
 0x115   : > { %v392_v34 = vmul.f32 %v1408_v32, %v389_v29  ;;  %vm398_vm2 = vweird.f32 %v1408_v32 }
 0x116   : > { %1409 = vrsqrt.f32 %v390_v33  ;;  %vm399_vm4 = vmor %vm397_vm3, %vm398_vm2  ;;  %vm407_vm6 = vweird.f32 %v390_v33 }
 0x117   : > { %v393_v35 = vmul.f32 %v1408_v32, %v392_v34 }
 0x119   : > { %v394_v36 = vmul.f32 0.5, %v393_v35 }
 0x11b   : > { %v395_v37 = vsub.f32 1.5, %v394_v36  ;;  %v1399_v36 = vld [vmem:[%s1818_s4 + $0x1] ss:$0 sm:$0xff] }
 0x11c   : > { %v1410_v38 = vpop.eup %1409 }
 0x11d   : > { %v396_v39 = vmul.f32 %v1408_v32, %v395_v37  ;;  %v402_v40 = vmul.f32 %v1410_v38, %v390_v33  ;;  %vm408_vm5 = vweird.f32 %v1410_v38 }
 0x11e   : > { %vm409_vm7 = vmor %vm407_vm6, %vm408_vm5 }
 0x11f   : > { %v403_v41 = vmul.f32 %v1410_v38, %v402_v40  ;;  %v400_v42 = vsel %vm399_vm4, %v1408_v32, %v396_v39 }
 0x120   : > { %v411_v46 = vmul.f32 %v400_v42, %v377_v13  ;;  %v1398_v13 = vld [vmem:[%s1820_s6 + $0x1] ss:$0 sm:$0xff] }
 0x121   : > { %v404_v43 = vmul.f32 0.5, %v403_v41  ;;  %v1344_v41 = vld [vmem:[%s1817_s3 + $0x40] sm:$0xff] }
 0x122   : > { %v417_v50 = vmul.f32 %v1394_v45, %v411_v46 }
 0x123   : > { %v405_v44 = vsub.f32 1.5, %v404_v43  ;;  %v1343_v43 = vld [vmem:[%s1817_s3 + $0x38] sm:$0xff] }
 0x124   : > { %v423_v53 = vadd.f32 %v1395_v49, %v417_v50 }
 0x125   : > { %v406_v47 = vmul.f32 %v1410_v38, %v405_v44  ;;  %v1229_v44 = vld [vmem:[%s1821_s7 + $0x4] sm:$0xf] }
 0x127   : > { %v410_v48 = vsel %vm409_vm7, %v1410_v38, %v406_v47 }
 0x128   : > { %v412_v51 = vmul.f32 %v410_v48, %v378_v18  ;;  %v1338_v18 = vld [vmem:[%s1817_s3 + $0x28] sm:$0xff]  ;;  %v1232_v48 = vld [vmem:[%s1822_s8 + $0x4] sm:$0xf] }
 0x12a   : > { %v418_v52 = vmul.f32 %v1394_v45, %v412_v51  ;;  %v1342_v45 = vld [vmem:[%s1817_s3 + $0x30] sm:$0xff] }
 0x12c   : > { %v424_v54 = vadd.f32 %v1395_v49, %v418_v52  ;;  %v714_v49 = vsel %vm712_vm10, %v1232_v48, 0 }
 0x12e   : > { %v1628_v55 = vpack.c.bf16 %v424_v54, %v423_v53  ;;  %v1400_v54 = vld [vmem:[%s1818_s4 + $0x2] ss:$0 sm:$0xff] }
 0x130   : > { %1173 = vmatmul.msk.bf16.vlgmr.msra.gmra.mxu0 %vm361_vm0, %v1628_v55  ;;  %1186 = vmatmul.msk.bf16.vlgmr.msra.gmra.mxu1 %vm361_vm0, %v1628_v55 }
 0x1ad   : > { %v466_v56 = vpop.f32.mrf.mxu0  ;;  %v508_v57 = vpop.f32.mrf.mxu1 }
 0x1ae   : > { %v467_v62 = vadd.f32 %v1396_v58, %v466_v56  ;;  %v509_v63 = vadd.f32 %v1397_v59, %v508_v57 }
 0x1b5   : > { %v468_v60 = vpop.f32.mrf.mxu0  ;;  %v510_v61 = vpop.f32.mrf.mxu1 }
 0x1b6   : > { %v469_v0 = vadd.f32 %v1396_v58, %v468_v60  ;;  %v511_v1 = vadd.f32 %v1397_v59, %v510_v61  ;;  %v1347_v61 = vld [vmem:[%s1819_s5 + $0x40] sm:$0xff] }
 0x1b8   : > { %v546_v2 = vpack.c.bf16 %v511_v1, %v509_v63  ;;  %v514_v3 = vpack.c.bf16 %v469_v0, %v467_v62  ;;  %v1346_v62 = vld [vmem:[%s1819_s5 + $0x38] sm:$0xff]  ;;  %v1345_v63 = vld [vmem:[%s1819_s5 + $0x30] sm:$0xff] }
 0x1ba   : > { %557 = vmatpush.bf16.msra.mxu3 %v546_v2  ;;  %v520_v5 = vsel %vm515_vm8, %v514_v3, 0 }
 0x1bb   : > { %529 = vmatpush.bf16.xpose.msra.mxu2 %v520_v5 }
 0x1be   : > { %602 = vmatpush.bf16.msrb.mxu3 %v1338_v18 }
 0x1c2   : > { %1187 = vmatmul.msk.bf16.vlgmr.msra.gmra.mxu2 %vm515_vm8, %v513_v7  ;;  %603 = vmatpush.bf16.msrb.mxu3 %v1337_v19  ;;  %v1349_v7 = vld [vmem:[%s1817_s3 + $0x50] sm:$0xff]  ;;  %v1275_v19 = vld [vmem:[%s1821_s7 + $0x8] sm:$0xf] }
 0x1c3   : > { %646 = vmatpush.bf16.msrb.mxu2 %v1341_v4  ;;  %v1350_v4 = vld [vmem:[%s1817_s3 + $0x58] sm:$0xff] }
 0x1c6   : > { %604 = vmatpush.bf16.msrb.mxu3 %v1336_v20  ;;  %v1401_v20 = vld [vmem:[%s1820_s6 + $0x2] ss:$0 sm:$0xff] }
 0x1c7   : > { %647 = vmatpush.bf16.msrb.mxu2 %v1340_v6 }
 0x1cb   : > { %648 = vmatpush.bf16.msrb.mxu2 %v1339_v8  ;;  %v1348_v8 = vld [vmem:[%s1817_s3 + $0x48] sm:$0xff] }
 0x1cf   : > { %742 = vmatpush.bf16.msra.mxu2 %v733_v28 }
 0x1d2   : > { %1228 = vmatmul.msk.bf16.vlgmr.msrb.gmra.mxu2 %vm361_vm0, %v1628_v55 }
 0x245   : > { %v531_v9 = vpop.f32.mrf.mxu2 }
 0x246   : > { %v536_v10 = vsel %vm535_vm9, %v531_v9, -inf }
 0x247   : > { %537 = vmax.xlane.f32.xlu2 %v536_v10 }
 0x24d   : > { %v533_v11 = vpop.f32.mrf.mxu2 }
 0x255   : > { %v650_v12 = vpop.f32.mrf.mxu2 }
 0x256   : > { %v651_v15 = vadd.f32 %v1398_v13, %v650_v12 }
 0x25d   : > { %v652_v14 = vpop.f32.mrf.mxu2 }
 0x25e   : > { %v653_v16 = vadd.f32 %v1398_v13, %v652_v14  ;;  %v1353_v13 = vld [vmem:[%s1819_s5 + $0x58] sm:$0xff] }
 0x260   : > { %v687_v17 = vpack.c.bf16 %v653_v16, %v651_v15  ;;  %v1352_v15 = vld [vmem:[%s1819_s5 + $0x50] sm:$0xff] }
 0x262   : > { %698 = vmatpush.bf16.msrb.mxu1 %v687_v17  ;;  %v1351_v17 = vld [vmem:[%s1819_s5 + $0x48] sm:$0xff] }
 0x266   : > { %827 = vmatpush.bf16.msra.mxu1 %v1347_v61 }
 0x26a   : > { %828 = vmatpush.bf16.msra.mxu1 %v1346_v62 }
 0x26e   : > { %829 = vmatpush.bf16.msra.mxu1 %v1345_v63 }
 0x2ba   : > { %v538_v21 = vpop.xlane.xlu2 %537 }
 0x2bb   : > { %v539_v22 = vsub.f32 %v531_v9, %v538_v21 }
 0x2bd   : > { %v540_v23 = vmul.f32 1.442695, %v539_v22 }
 0x2bf   : > { %1411 = vpow2.f32 %v540_v23 }
 0x2c5   : > { %v1412_v24 = vpop.eup %1411 }
 0x2c6   : > { %v542_v25 = vsel %vm535_vm9, %v1412_v24, 0.0  ;;  %v545_v26 = vpack.c.bf16 %v1412_v24, %v1412_v24 }
 0x2c7   : > { %543 = vadd.xlane.f32.xlu1 %v542_v25 }
 0x2c8   : > { %1188 = vmatmul.msk.bf16.vlgmr.msra.gmra.mxu3 %vm535_vm9, %v545_v26  ;;  %v1402_v26 = vld [vmem:[%s1818_s4 + $0x3] ss:$0 sm:$0xff] }
 0x2c9   : > { %723 = vmatpush.bf16.msra.mxu3 %v714_v49 }
 0x2d8   : > { %1208 = vmatmul.msk.bf16.vlgmr.msrb.gmra.mxu3 %vm361_vm0, %v1628_v55 }
 0x33a   : > { %v544_v29 = vpop.xlane.xlu1 %543 }
 0x33b   : > { %1413 = vrcp.f32 %v544_v29 }
 0x341   : > { %v1414_v30 = vpop.eup %1413 }
 0x34b   : > { %v559_v31 = vpop.f32.mrf.mxu3 }
 0x34c   : > { %v564_v32 = vmul.f32 %v1414_v30, %v559_v31 }
 0x34e   : > { %v565_v33 = vpack.c.bf16 %v564_v32, %v564_v32 }
 0x350   : > { %1234 = vmatmul.msk.bf16.vlgmr.msra.gmra.mxu2 %vm515_vm8, %v565_v33 }
 0x353   : > { %v561_v34 = vpop.f32.mrf.mxu3 }
 0x354   : > { %v1278_v34 = vld [vmem:[%s1822_s8 + $0x8] sm:$0xf] }
 0x35b   : > { %v606_v35 = vpop.f32.mrf.mxu3 }
 0x35c   : > { %v607_v38 = vadd.f32 %v1399_v36, %v606_v35  ;;  %v894_v35 = vsel %vm712_vm10, %v1278_v34, 0 }
 0x363   : > { %v608_v37 = vpop.f32.mrf.mxu3 }
 0x364   : > { %v609_v39 = vadd.f32 %v1399_v36, %v608_v37 }
 0x366   : > { %v657_v40 = vpack.c.bf16 %v609_v39, %v607_v38  ;;  %v1403_v39 = vld [vmem:[%s1820_s6 + $0x3] ss:$0 sm:$0xff] }
 0x368   : > { %v662_v42 = vsel %vm515_vm8, %v657_v40, 0 }
 0x369   : > { %671 = vmatpush.bf16.xpose.msrb.mxu0 %v662_v42 }
 0x370   : > { %1230 = vmatmul.msk.bf16.vlgmr.msrb.gmra.mxu0 %vm515_vm8, %v1229_v44 }
 0x371   : > { %783 = vmatpush.bf16.msra.mxu0 %v1344_v41 }
 0x375   : > { %784 = vmatpush.bf16.msra.mxu0 %v1343_v43 }
 0x379   : > { %785 = vmatpush.bf16.msra.mxu0 %v1342_v45 }
 0x37d   : > { %903 = vmatpush.bf16.msrb.mxu0 %v894_v35 }
 0x380   : > { %1254 = vmatmul.msk.bf16.vlgmr.msra.gmra.mxu0 %vm361_vm0, %v1628_v55 }
 0x3d3   : > { %v1697_v46 = vpop.f32.mrf.mxu2 }
 0x3db   : > { %v746_v47 = vpop.f32.mrf.mxu2 }
 0x3ed   : > { %v673_v50 = vpop.f32.mrf.mxu0 }
 0x3ee   : > { %v677_v51 = vsel %vm535_vm9, %v673_v50, -inf }
 0x3ef   : > { %678 = vmax.xlane.f32.xlu2 %v677_v51  ;;  %v1320_v51 = vld [vmem:[%s1821_s7 + $0xc] sm:$0xf] }
 0x3f5   : > { %v675_v52 = vpop.f32.mrf.mxu0 }
 0x3fd   : > { %v787_v53 = vpop.f32.mrf.mxu0 }
 0x3fe   : > { %v788_v57 = vadd.f32 %v1400_v54, %v787_v53 }
 0x405   : > { %v789_v56 = vpop.f32.mrf.mxu0 }
 0x406   : > { %v790_v58 = vadd.f32 %v1400_v54, %v789_v56 }
 0x408   : > { %v838_v59 = vpack.c.bf16 %v790_v58, %v788_v57 }
 0x40a   : > { %v843_v60 = vsel %vm515_vm8, %v838_v59, 0 }
 0x40b   : > { %852 = vmatpush.bf16.xpose.msrb.mxu3 %v843_v60 }
 0x462   : > { %v679_v0 = vpop.xlane.xlu2 %678 }
 0x463   : > { %v680_v1 = vsub.f32 %v673_v50, %v679_v0 }
 0x465   : > { %v681_v2 = vmul.f32 1.442695, %v680_v1 }
 0x467   : > { %1415 = vpow2.f32 %v681_v2 }
 0x46d   : > { %v1416_v3 = vpop.eup %1415 }
 0x46e   : > { %v683_v5 = vsel %vm535_vm9, %v1416_v3, 0.0  ;;  %v686_v6 = vpack.c.bf16 %v1416_v3, %v1416_v3 }
 0x46f   : > { %684 = vadd.xlane.f32.xlu0 %v683_v5 }
 0x470   : > { %1231 = vmatmul.msk.bf16.vlgmr.msrb.gmra.mxu1 %vm535_vm9, %v686_v6 }
 0x471   : > { %945 = vmatpush.bf16.msrb.mxu1 %v1350_v4 }
 0x475   : > { %946 = vmatpush.bf16.msrb.mxu1 %v1349_v7 }
 0x479   : > { %947 = vmatpush.bf16.msrb.mxu1 %v1348_v8 }
 0x480   : > { %1274 = vmatmul.msk.bf16.vlgmr.msra.gmra.mxu1 %vm361_vm0, %v1628_v55 }
 0x490   : > { %1299 = vmatmul.msk.bf16.vlgmr.msrb.gmra.mxu1 %vm361_vm0, %v1628_v55 }
 0x4e2   : > { %v685_v9 = vpop.xlane.xlu0 %684 }
 0x4e3   : > { %1417 = vrcp.f32 %v685_v9 }
 0x4e9   : > { %v1418_v10 = vpop.eup %1417 }
 0x4ed   : > { %v700_v11 = vpop.f32.mrf.mxu1 }
 0x4ee   : > { %v705_v12 = vmul.f32 %v1418_v10, %v700_v11 }
 0x4f0   : > { %v706_v14 = vpack.c.bf16 %v705_v12, %v705_v12 }
 0x4f2   : > { %1233 = vmatmul.msk.bf16.vlgmr.msra.gmra.mxu3 %vm515_vm8, %v706_v14 }
 0x4f3   : > { %989 = vmatpush.bf16.msra.mxu3 %v1353_v13 }
 0x4f5   : > { %v702_v16 = vpop.f32.mrf.mxu1 }
 0x4f7   : > { %990 = vmatpush.bf16.msra.mxu3 %v1352_v15  ;;  %v1404_v15 = vld [vmem:[%s1823_s9] ss:$0 sm:$0xff] }
 0x4fb   : > { %991 = vmatpush.bf16.msra.mxu3 %v1351_v17 }
 0x4fd   : > { %v831_v18 = vpop.f32.mrf.mxu1 }
 0x4fe   : > { %v832_v22 = vadd.f32 %v1401_v20, %v831_v18 }
 0x502   : > { %1276 = vmatmul.msk.bf16.vlgmr.msrb.gmra.mxu3 %vm515_vm8, %v1275_v19 }
 0x505   : > { %v833_v21 = vpop.f32.mrf.mxu1 }
 0x506   : > { %v834_v23 = vadd.f32 %v1401_v20, %v833_v21 }
 0x508   : > { %v868_v24 = vpack.c.bf16 %v834_v23, %v832_v22 }
 0x50a   : > { %879 = vmatpush.bf16.msrb.mxu2 %v868_v24 }
 0x50d   : > { %v949_v25 = vpop.f32.mrf.mxu1 }
 0x50e   : > { %v950_v28 = vadd.f32 %v1402_v26, %v949_v25 }
 0x512   : > { %1319 = vmatmul.msk.bf16.vlgmr.msra.gmra.mxu3 %vm361_vm0, %v1628_v55 }
 0x515   : > { %v951_v27 = vpop.f32.mrf.mxu1 }
 0x516   : > { %v952_v29 = vadd.f32 %v1402_v26, %v951_v27 }
 0x518   : > { %v1000_v30 = vpack.c.bf16 %v952_v29, %v950_v28 }
 0x51a   : > { %v1005_v31 = vsel %vm515_vm8, %v1000_v30, 0 }
 0x51b   : > { %1014 = vmatpush.bf16.xpose.msra.mxu2 %v1005_v31 }
 0x575   : > { %v725_v32 = vpop.f32.mrf.mxu3 }
 0x576   : > { %v745_v62 = vadd.f32 %v1697_v46, %v725_v32  ;;  %v1323_v46 = vld [vmem:[%s1822_s8 + $0xc] sm:$0xf] }
 0x577   : > { %v1056_v8 = vsel %vm712_vm10, %v1323_v46, 0 }
 0x578   : > { %1065 = vmatpush.bf16.msra.mxu1 %v1056_v8 }
 0x57d   : > { %v727_v33 = vpop.f32.mrf.mxu3 }
 0x585   : > { %v854_v36 = vpop.f32.mrf.mxu3 }
 0x586   : > { %v858_v37 = vsel %vm535_vm9, %v854_v36, -inf }
 0x587   : > { %859 = vmax.xlane.f32.xlu2 %v858_v37 }
 0x58d   : > { %v856_v55 = vpop.f32.mrf.mxu3 }
 0x595   : > { %v993_v38 = vpop.f32.mrf.mxu3 }
 0x596   : > { %v994_v41 = vadd.f32 %v1403_v39, %v993_v38 }
 0x59d   : > { %v995_v40 = vpop.f32.mrf.mxu3 }
 0x59e   : > { %v996_v42 = vadd.f32 %v1403_v39, %v995_v40 }
 0x5a0   : > { %v1030_v43 = vpack.c.bf16 %v996_v42, %v994_v41 }
 0x5a2   : > { %1041 = vmatpush.bf16.msra.mxu0 %v1030_v43 }
 0x5fa   : > { %v860_v44 = vpop.xlane.xlu2 %859 }
 0x5fb   : > { %v861_v45 = vsub.f32 %v854_v36, %v860_v44 }
 0x5fd   : > { %v862_v47 = vmul.f32 1.442695, %v861_v45 }
 0x5ff   : > { %1419 = vpow2.f32 %v862_v47 }
 0x605   : > { %v1420_v48 = vpop.eup %1419 }
 0x606   : > { %v867_v49 = vpack.c.bf16 %v1420_v48, %v1420_v48  ;;  %v864_v50 = vsel %vm535_vm9, %v1420_v48, 0.0 }
 0x607   : > { %865 = vadd.xlane.f32.xlu0 %v864_v50 }
 0x608   : > { %1277 = vmatmul.msk.bf16.vlgmr.msrb.gmra.mxu2 %vm535_vm9, %v867_v49 }
 0x618   : > { %1321 = vmatmul.msk.bf16.vlgmr.msra.gmra.mxu2 %vm515_vm8, %v1320_v51 }
 0x67a   : > { %v866_v52 = vpop.xlane.xlu0 %865 }
 0x67b   : > { %1421 = vrcp.f32 %v866_v52 }
 0x681   : > { %v1422_v53 = vpop.eup %1421 }
 0x68b   : > { %v881_v54 = vpop.f32.mrf.mxu2 }
 0x68c   : > { %v886_v56 = vmul.f32 %v1422_v53, %v881_v54 }
 0x68e   : > { %v887_v57 = vpack.c.bf16 %v886_v56, %v886_v56 }
 0x690   : > { %1279 = vmatmul.msk.bf16.vlgmr.msrb.gmra.mxu0 %vm515_vm8, %v887_v57 }
 0x693   : > { %v883_v58 = vpop.f32.mrf.mxu2 }
 0x69b   : > { %v1016_v59 = vpop.f32.mrf.mxu2 }
 0x69c   : > { %v1020_v60 = vsel %vm535_vm9, %v1016_v59, -inf }
 0x69d   : > { %1021 = vmax.xlane.f32.xlu1 %v1020_v60 }
 0x6a3   : > { %v1018_v61 = vpop.f32.mrf.mxu2 }
 0x70d   : > { %v905_v63 = vpop.f32.mrf.mxu0 }
 0x70e   : > { %v909_v0 = vadd.f32 %v905_v63, %v745_v62 }
 0x710   : > { %v1022_v1 = vpop.xlane.xlu1 %1021 }
 0x711   : > { %v1023_v2 = vsub.f32 %v1016_v59, %v1022_v1 }
 0x713   : > { %v1024_v3 = vmul.f32 1.442695, %v1023_v2 }
 0x715   : > { %1423 = vpow2.f32 %v1024_v3  ;;  %v907_v4 = vpop.f32.mrf.mxu0 }
 0x71b   : > { %v1424_v5 = vpop.eup %1423 }
 0x71c   : > { %v1029_v6 = vpack.c.bf16 %v1424_v5, %v1424_v5  ;;  %v1026_v7 = vsel %vm535_vm9, %v1424_v5, 0.0 }
 0x71d   : > { %1027 = vadd.xlane.f32.xlu2 %v1026_v7 }
 0x71e   : > { %1322 = vmatmul.msk.bf16.vlgmr.msra.gmra.mxu0 %vm535_vm9, %v1029_v6 }
 0x790   : > { %v1028_v9 = vpop.xlane.xlu2 %1027 }
 0x791   : > { %1425 = vrcp.f32 %v1028_v9 }
 0x797   : > { %v1426_v10 = vpop.eup %1425 }
 0x79b   : > { %v1043_v11 = vpop.f32.mrf.mxu0 }
 0x79c   : > { %v1048_v12 = vmul.f32 %v1426_v10, %v1043_v11 }
 0x79e   : > { %v1049_v13 = vpack.c.bf16 %v1048_v12, %v1048_v12 }
 0x7a0   : > { %1324 = vmatmul.msk.bf16.vlgmr.msra.gmra.mxu1 %vm515_vm8, %v1049_v13 }
 0x7a3   : > { %v1045_v14 = vpop.f32.mrf.mxu0 }
 0x81d   : > { %v1067_v16 = vpop.f32.mrf.mxu1 }
 0x81e   : > { %v1071_v17 = vadd.f32 %v1067_v16, %v909_v0 }
 0x820   : > { %v1076_v18 = vadd.f32 %v1404_v15, %v1071_v17 }
 0x822   : > { %1078 = vst.msk [vmem:[%s352_s20] sm:$0xff] %vm1077_vm11, %v1076_v18 }
 0x823   : > { %1454 = shalt.err (!%p1451_p3)
}
 0x824   : > { %1354 = dma.vmem_to_hbm [thread:$0]  (%p1585_p5), %s1093_s21, 128, %s1095_s25, %s1080_s17  }
 0x825   : > { %v1069_v19 = vpop.f32.mrf.mxu1 }
 0x826 PF: > { %p1360_p4 = scmp.ge.s32.totalorder %s1489_s16, 2  ;;  %s1106_s26 = sand.u32 1, %s1477_s13  }
 0x827   : > { %s1107_s18 = scalar_lea.sflag [#allocation3], %s1106_s26 }
 0x828   : > { %p1357_p7 = pnand %p1360_p4, %p1589_p6 }
 0x82a   : > { %p1358_p8 = pneg %p1357_p7 }
 0x82c   : > { %1472 = dma.done.wait (%p1358_p8), %s1107_s18, 128  }
 0x82d   : > { %1474 = vsyncadd (%p1358_p8), %s1107_s18, 4294967168  ;;  %p20_p9 = scmp.ge.s32.totalorder %s1572_s19, 4   ;;  %s1829_s13 = smov %s1481_s14 }
 0x82e   : > { %s1830_s14 = smov %s1485_s15  ;;  %s1831_s15 = smov %s1583_s22 }
 0x82f   : > { %s1832_s16 = smov %s1572_s19  ;;  %22 = sbr.rel (!%p20_p9) target bundleno = 5 (0x5), region = 113 }
 0x834   :  { %1113 = vsyncpa [#allocation3], 1 }
 0x835   :  { %1115 = vsyncpa [#allocation3 + $0x1], 1 }

</bundles_post_ra>
